<compile_context>
chip_gen: v6e
topology: v6e:2x2x1
jax: 0.10.0
libtpu: 0.0.40
codegen_flags: <defaults>
</compile_context>

<pallas_src>
import functools
import math

import jax
import jax.numpy as jnp
from jax.experimental import pallas as pl
from jax.experimental.pallas import tpu as pltpu

# ---- small synthetic Config (same field meanings as the PyTorch Config) ----
D_MODEL = 64
N_HEADS = 4
D_HEAD = 16
D_MLP = 128
SEQ = 8
BATCH = 2
LN_EPS = 1e-5
INIT_RANGE = 0.02
IGNORE = -100000.0  # Attention.IGNORE buffer value


def _gelu_new(x):
    # GPT-2 "new" gelu (tanh approximation); tanh runs on the EUP.
    return 0.5 * x * (1.0 + jnp.tanh(
        math.sqrt(2.0 / math.pi) * (x + 0.044715 * x ** 3)))


def transformer_block_kernel(
        x_ref,                  # (R, D)        residual rows (batch*seq folded)
        mask_ref,               # (R, R)        1.0 where attention is allowed
        ln1w_ref, ln1b_ref,     # (1, D)
        wqkv_ref,               # (D, 3*H*dh)   fused Q|K|V projection (matmul dtype)
        bqkv_ref,               # (1, 3*H*dh)
        wo_ref,                 # (H*dh, D)     fused output projection (matmul dtype)
        bo_ref,                 # (1, D)
        ln2w_ref, ln2b_ref,     # (1, D)
        win_ref,                # (D, D_mlp)
        bin_ref,                # (1, D_mlp)
        wout_ref,               # (D_mlp, D)
        bout_ref,               # (1, D)
        o_ref,                  # (R, D)
        *, n_heads, d_head, compute_dtype, recip_approx):
    x = x_ref[...]                                   # (R, D) float32
    hdh = n_heads * d_head
    cd = compute_dtype

    def layer_norm(v, w, b):
        # matches t.var(..., unbiased=False); rsqrt runs on the EUP.
        mean = jnp.mean(v, axis=-1, keepdims=True)
        var = jnp.mean((v - mean) ** 2, axis=-1, keepdims=True)
        return (v - mean) * jax.lax.rsqrt(var + LN_EPS) * w + b

    def mm(a, b):
        # MXU matmul: optionally bf16 inputs, always f32 accumulation.
        return jnp.dot(a.astype(cd), b.astype(cd),
                       preferred_element_type=jnp.float32)

    # ---- LN1 + fused QKV projection (one full-width matmul) ----
    nr = layer_norm(x, ln1w_ref[...], ln1b_ref[...])
    qkv = mm(nr, wqkv_ref[...]) + bqkv_ref[...]      # (R, 3*H*dh) f32

    inv_sqrt_dh = 1.0 / (d_head ** 0.5)
    q = qkv[:, :hdh] * inv_sqrt_dh                   # fold 1/sqrt(d_head) into q once
    k = qkv[:, hdh:2 * hdh]
    v = qkv[:, 2 * hdh:]

    # ---- hoisted loop invariants ----
    allowed = mask_ref[...] > 0.5                    # (R, R) block-diag causal mask
    neg = jnp.full(allowed.shape, IGNORE, jnp.float32)

    # ---- per-head scores / softmax / weighted values (d_head is inherently small) ----
    z_heads = []
    for h in range(n_heads):
        sl = slice(h * d_head, (h + 1) * d_head)
        # q_h @ k_h^T via dot_general contracting the d_head axes (no explicit k.T)
        s_h = jax.lax.dot_general(
            q[:, sl].astype(cd), k[:, sl].astype(cd),
            dimension_numbers=(((1,), (1,)), ((), ())),
            preferred_element_type=jnp.float32)      # (R, R)
        s_h = jnp.where(allowed, s_h, neg)
        m_h = jnp.max(s_h, axis=-1, keepdims=True)
        e_h = jnp.exp(s_h - m_h)                                      # EUP exp
        inv_denom = pl.reciprocal(jnp.sum(e_h, axis=-1, keepdims=True),
                                  approx=recip_approx)                # EUP reciprocal
        p_h = e_h * inv_denom
        z_heads.append(mm(p_h, v[:, sl]))            # (R, d_head)
    z = jnp.concatenate(z_heads, axis=1)             # (R, H*dh)

    # ---- fused output projection + residual ----
    attn_out = mm(z, wo_ref[...]) + bo_ref[...]
    resid_mid = x + attn_out

    # ---- LN2 + MLP (gelu_new) ----
    nr2 = layer_norm(resid_mid, ln2w_ref[...], ln2b_ref[...])
    pre = mm(nr2, win_ref[...]) + bin_ref[...]
    act = _gelu_new(pre)
    mlp_out = mm(act, wout_ref[...]) + bout_ref[...]

    o_ref[...] = resid_mid + mlp_out


def _fuse_attention_weights(params, matmul_dtype):
    """Repack per-head attention weights into lane-dense fused matrices."""
    H, D, dh = params["W_Q"].shape
    hdh = H * dh

    def fold_heads(w):                  # (H, D, dh) -> (D, H*dh); column = h*dh + e
        return jnp.transpose(w, (1, 0, 2)).reshape(D, hdh)

    w_qkv = jnp.concatenate(
        [fold_heads(params["W_Q"]), fold_heads(params["W_K"]),
         fold_heads(params["W_V"])], axis=1).astype(matmul_dtype)     # (D, 3*H*dh)
    b_qkv = jnp.concatenate(
        [params["b_Q"].reshape(1, hdh), params["b_K"].reshape(1, hdh),
         params["b_V"].reshape(1, hdh)], axis=1).astype(jnp.float32)  # (1, 3*H*dh)
    w_o = params["W_O"].reshape(hdh, D).astype(matmul_dtype)          # (H*dh, D)
    return w_qkv, b_qkv, w_o


def transformer_block(resid, params, *, matmul_dtype=jnp.float32):
    """Pallas forward of TransformerBlock.  resid: (B, S, D) float32."""
    B, S, D = resid.shape
    H, _, dh = params["W_Q"].shape
    R = B * S

    # Fold batch into the sublane axis: one kernel invocation over (B*S, D).
    x2d = resid.reshape(R, D)

    # Block-diagonal causal mask over the folded rows (same batch AND q >= k),
    # precomputed once in the wrapper (hoisted out of the kernel's head loop).
    rows = jnp.arange(R)
    same_batch = (rows[:, None] // S) == (rows[None, :] // S)
    causal = rows[:, None] >= rows[None, :]
    mask = (same_batch & causal).astype(jnp.float32)                  # (R, R)

    w_qkv, b_qkv, w_o = _fuse_attention_weights(params, matmul_dtype)

    kernel = functools.partial(
        transformer_block_kernel,
        n_heads=H, d_head=dh, compute_dtype=matmul_dtype,
        recip_approx=(matmul_dtype != jnp.float32))

    n_inputs = 14
    out2d = pl.pallas_call(
        kernel,
        out_shape=jax.ShapeDtypeStruct((R, D), jnp.float32),
        in_specs=[pl.BlockSpec(memory_space=pltpu.MemorySpace.VMEM)
                  for _ in range(n_inputs)],
        out_specs=pl.BlockSpec(memory_space=pltpu.MemorySpace.VMEM),
    )(x2d, mask,
      params["ln1_w"], params["ln1_b"],
      w_qkv, b_qkv, w_o, params["b_O"],
      params["ln2_w"], params["ln2_b"],
      params["W_in"].astype(matmul_dtype), params["b_in"],
      params["W_out"].astype(matmul_dtype), params["b_out"])
    return out2d.reshape(B, S, D)


def reference_block(resid, p):
    """Pure-JAX f32 reference matching the PyTorch forward semantics."""
    def ln(x, w, b):
        m = x.mean(-1, keepdims=True)
        v = ((x - m) ** 2).mean(-1, keepdims=True)
        return (x - m) / jnp.sqrt(v + LN_EPS) * w + b

    nr = ln(resid, p["ln1_w"], p["ln1_b"])
    Q = jnp.einsum("bsd,hde->bshe", nr, p["W_Q"]) + p["b_Q"]
    K = jnp.einsum("bsd,hde->bshe", nr, p["W_K"]) + p["b_K"]
    V = jnp.einsum("bsd,hde->bshe", nr, p["W_V"]) + p["b_V"]
    scores = jnp.einsum("bqhe,bkhe->bhqk", Q, K) / (D_HEAD ** 0.5)
    S = resid.shape[1]
    causal = jnp.arange(S)[:, None] >= jnp.arange(S)[None, :]
    scores = jnp.where(causal, scores, IGNORE)
    probs = jax.nn.softmax(scores, axis=-1)
    z = jnp.einsum("bhqk,bkhe->bqhe", probs, V)
    attn_out = jnp.einsum("bqhe,hed->bqd", z, p["W_O"]) + p["b_O"]
    resid_mid = resid + attn_out
    nr2 = ln(resid_mid, p["ln2_w"], p["ln2_b"])
    ins = nr2 @ p["W_in"] + p["b_in"]
    act = _gelu_new(ins)
    mlp_out = act @ p["W_out"] + p["b_out"]
    return resid_mid + mlp_out


def init_params(key):
    ks = jax.random.split(key, 6)
    n = lambda k, shape: (INIT_RANGE * jax.random.normal(k, shape)).astype(jnp.float32)
    return {
        "ln1_w": jnp.ones((1, D_MODEL), jnp.float32),
        "ln1_b": jnp.zeros((1, D_MODEL), jnp.float32),
        "W_Q": n(ks[0], (N_HEADS, D_MODEL, D_HEAD)),
        "W_K": n(ks[1], (N_HEADS, D_MODEL, D_HEAD)),
        "W_V": n(ks[2], (N_HEADS, D_MODEL, D_HEAD)),
        "W_O": n(ks[3], (N_HEADS, D_HEAD, D_MODEL)),
        "b_Q": jnp.zeros((N_HEADS, D_HEAD), jnp.float32),
        "b_K": jnp.zeros((N_HEADS, D_HEAD), jnp.float32),
        "b_V": jnp.zeros((N_HEADS, D_HEAD), jnp.float32),
        "b_O": jnp.zeros((1, D_MODEL), jnp.float32),
        "ln2_w": jnp.ones((1, D_MODEL), jnp.float32),
        "ln2_b": jnp.zeros((1, D_MODEL), jnp.float32),
        "W_in": n(ks[4], (D_MODEL, D_MLP)),
        "b_in": jnp.zeros((1, D_MLP), jnp.float32),
        "W_out": n(ks[5], (D_MLP, D_MODEL)),
        "b_out": jnp.zeros((1, D_MODEL), jnp.float32),
    }


if __name__ == "__main__":
    key = jax.random.PRNGKey(0)
    k_x, k_p = jax.random.split(key)
    params = init_params(k_p)
    resid_pre = jax.random.normal(k_x, (BATCH, SEQ, D_MODEL), jnp.float32)

    ref = reference_block(resid_pre, params)

    # f32 MXU inputs: matches the f32 PyTorch semantics tightly.
    out = jax.block_until_ready(transformer_block(resid_pre, params))
    assert out.shape == (BATCH, SEQ, D_MODEL)
    assert jnp.allclose(out, ref, atol=1e-4, rtol=1e-4), "f32 kernel mismatch vs reference"

    # bf16 MXU inputs (v6e/v7x fast path), f32 accumulation: looser tolerance.
    out_bf16 = jax.block_until_ready(
        transformer_block(resid_pre, params, matmul_dtype=jnp.bfloat16))
    assert jnp.allclose(out_bf16, ref, atol=2e-2, rtol=2e-2), "bf16 kernel mismatch vs reference"

    print("KERNEL_OK")
</pallas_src>

<mosaic_0001>
module attributes {stable_mosaic.version = 11 : i64} {
  func.func @transformer_block_kernel(%arg0: memref<16x64xf32, #tpu.memory_space<vmem>>, %arg1: memref<16x16xf32, #tpu.memory_space<vmem>>, %arg2: memref<1x64xf32, #tpu.memory_space<vmem>>, %arg3: memref<1x64xf32, #tpu.memory_space<vmem>>, %arg4: memref<64x192xf32, #tpu.memory_space<vmem>>, %arg5: memref<1x192xf32, #tpu.memory_space<vmem>>, %arg6: memref<64x64xf32, #tpu.memory_space<vmem>>, %arg7: memref<1x64xf32, #tpu.memory_space<vmem>>, %arg8: memref<1x64xf32, #tpu.memory_space<vmem>>, %arg9: memref<1x64xf32, #tpu.memory_space<vmem>>, %arg10: memref<64x128xf32, #tpu.memory_space<vmem>>, %arg11: memref<1x128xf32, #tpu.memory_space<vmem>>, %arg12: memref<128x64xf32, #tpu.memory_space<vmem>>, %arg13: memref<1x64xf32, #tpu.memory_space<vmem>>, %arg14: memref<16x64xf32, #tpu.memory_space<vmem>>) attributes {dimension_semantics = [], scalar_prefetch = 0 : i64, scratch_operands = 0 : i64, tpu.core_type = #tpu.core_type<tc>} {
    %c0 = arith.constant 0 : index
    %c0_0 = arith.constant 0 : index
    %0 = vector.load %arg0[%c0, %c0_0] : memref<16x64xf32, #tpu.memory_space<vmem>>, vector<16x64xf32>
    %c0_1 = arith.constant 0 : index
    %c0_2 = arith.constant 0 : index
    %1 = vector.load %arg2[%c0_1, %c0_2] : memref<1x64xf32, #tpu.memory_space<vmem>>, vector<1x64xf32>
    %c0_3 = arith.constant 0 : index
    %c0_4 = arith.constant 0 : index
    %2 = vector.load %arg3[%c0_3, %c0_4] : memref<1x64xf32, #tpu.memory_space<vmem>>, vector<1x64xf32>
    %cst = arith.constant dense<0.000000e+00> : vector<16xf32>
    %3 = vector.multi_reduction <add>, %0, %cst [1] : vector<16x64xf32> to vector<16xf32>
    %4 = vector.shape_cast %3 : vector<16xf32> to vector<16x1xf32>
    %cst_5 = arith.constant 6.400000e+01 : f32
    %5 = vector.broadcast %cst_5 : f32 to vector<16x1xf32>
    %6 = arith.divf %4, %5 : vector<16x1xf32>
    %7 = vector.broadcast %6 : vector<16x1xf32> to vector<16x64xf32>
    %8 = arith.subf %0, %7 : vector<16x64xf32>
    %9 = arith.mulf %8, %8 : vector<16x64xf32>
    %cst_6 = arith.constant dense<0.000000e+00> : vector<16xf32>
    %10 = vector.multi_reduction <add>, %9, %cst_6 [1] : vector<16x64xf32> to vector<16xf32>
    %11 = vector.shape_cast %10 : vector<16xf32> to vector<16x1xf32>
    %cst_7 = arith.constant 6.400000e+01 : f32
    %12 = vector.broadcast %cst_7 : f32 to vector<16x1xf32>
    %13 = arith.divf %11, %12 : vector<16x1xf32>
    %14 = vector.broadcast %6 : vector<16x1xf32> to vector<16x64xf32>
    %15 = arith.subf %0, %14 : vector<16x64xf32>
    %cst_8 = arith.constant 9.99999974E-6 : f32
    %16 = vector.broadcast %cst_8 : f32 to vector<16x1xf32>
    %17 = arith.addf %13, %16 : vector<16x1xf32>
    %18 = math.rsqrt %17 : vector<16x1xf32>
    %19 = vector.broadcast %18 : vector<16x1xf32> to vector<16x64xf32>
    %20 = arith.mulf %15, %19 : vector<16x64xf32>
    %21 = vector.broadcast %1 : vector<1x64xf32> to vector<16x64xf32>
    %22 = arith.mulf %20, %21 : vector<16x64xf32>
    %23 = vector.broadcast %2 : vector<1x64xf32> to vector<16x64xf32>
    %24 = arith.addf %22, %23 : vector<16x64xf32>
    %c0_9 = arith.constant 0 : index
    %c0_10 = arith.constant 0 : index
    %25 = vector.load %arg4[%c0_9, %c0_10] : memref<64x192xf32, #tpu.memory_space<vmem>>, vector<64x192xf32>
    %cst_11 = arith.constant dense<0.000000e+00> : vector<16x192xf32>
    %26 = tpu.matmul %24, %25, %cst_11 {dimension_numbers = #tpu.dot_dimension_numbers<[1], [0], [0], [1], [0, 0, 1, 1], [], []>} : vector<16x64xf32>, vector<64x192xf32>, vector<16x192xf32> -> vector<16x192xf32>
    %c0_12 = arith.constant 0 : index
    %c0_13 = arith.constant 0 : index
    %27 = vector.load %arg5[%c0_12, %c0_13] : memref<1x192xf32, #tpu.memory_space<vmem>>, vector<1x192xf32>
    %28 = vector.broadcast %27 : vector<1x192xf32> to vector<16x192xf32>
    %29 = arith.addf %26, %28 : vector<16x192xf32>
    %30 = vector.extract_strided_slice %29 {offsets = [0, 0], sizes = [16, 64], strides = [1, 1]} : vector<16x192xf32> to vector<16x64xf32>
    %cst_14 = arith.constant 2.500000e-01 : f32
    %31 = vector.broadcast %cst_14 : f32 to vector<16x64xf32>
    %32 = arith.mulf %30, %31 : vector<16x64xf32>
    %33 = vector.extract_strided_slice %29 {offsets = [0, 64], sizes = [16, 64], strides = [1, 1]} : vector<16x192xf32> to vector<16x64xf32>
    %34 = vector.extract_strided_slice %29 {offsets = [0, 128], sizes = [16, 64], strides = [1, 1]} : vector<16x192xf32> to vector<16x64xf32>
    %c0_15 = arith.constant 0 : index
    %c0_16 = arith.constant 0 : index
    %35 = vector.load %arg1[%c0_15, %c0_16] : memref<16x16xf32, #tpu.memory_space<vmem>>, vector<16x16xf32>
    %cst_17 = arith.constant 5.000000e-01 : f32
    %36 = vector.broadcast %cst_17 : f32 to vector<16x16xf32>
    %37 = arith.cmpf ogt, %35, %36 : vector<16x16xf32>
    %cst_18 = arith.constant -1.000000e+05 : f32
    %38 = vector.broadcast %cst_18 : f32 to vector<16x16xf32>
    %39 = vector.extract_strided_slice %32 {offsets = [0, 0], sizes = [16, 16], strides = [1, 1]} : vector<16x64xf32> to vector<16x16xf32>
    %40 = vector.extract_strided_slice %33 {offsets = [0, 0], sizes = [16, 16], strides = [1, 1]} : vector<16x64xf32> to vector<16x16xf32>
    %cst_19 = arith.constant dense<0.000000e+00> : vector<16x16xf32>
    %41 = tpu.matmul %39, %40, %cst_19 {dimension_numbers = #tpu.dot_dimension_numbers<[1], [1], [0], [0], [0, 0, 1, 0], [], []>} : vector<16x16xf32>, vector<16x16xf32>, vector<16x16xf32> -> vector<16x16xf32>
    %42 = arith.select %37, %41, %38 : vector<16x16xi1>, vector<16x16xf32>
    %cst_20 = arith.constant dense<0xFF800000> : vector<16xf32>
    %43 = vector.multi_reduction <maximumf>, %42, %cst_20 [1] : vector<16x16xf32> to vector<16xf32>
    %44 = vector.shape_cast %43 : vector<16xf32> to vector<16x1xf32>
    %45 = vector.broadcast %44 : vector<16x1xf32> to vector<16x16xf32>
    %46 = arith.subf %42, %45 : vector<16x16xf32>
    %47 = math.exp %46 : vector<16x16xf32>
    %cst_21 = arith.constant dense<0.000000e+00> : vector<16xf32>
    %48 = vector.multi_reduction <add>, %47, %cst_21 [1] : vector<16x16xf32> to vector<16xf32>
    %49 = vector.shape_cast %48 : vector<16xf32> to vector<16x1xf32>
    %50 = tpu.reciprocal %49 : vector<16x1xf32> -> vector<16x1xf32>
    %51 = vector.broadcast %50 : vector<16x1xf32> to vector<16x16xf32>
    %52 = arith.mulf %47, %51 : vector<16x16xf32>
    %53 = vector.extract_strided_slice %34 {offsets = [0, 0], sizes = [16, 16], strides = [1, 1]} : vector<16x64xf32> to vector<16x16xf32>
    %cst_22 = arith.constant dense<0.000000e+00> : vector<16x16xf32>
    %54 = tpu.matmul %52, %53, %cst_22 {dimension_numbers = #tpu.dot_dimension_numbers<[1], [0], [0], [1], [0, 0, 1, 1], [], []>} : vector<16x16xf32>, vector<16x16xf32>, vector<16x16xf32> -> vector<16x16xf32>
    %55 = vector.extract_strided_slice %32 {offsets = [0, 16], sizes = [16, 16], strides = [1, 1]} : vector<16x64xf32> to vector<16x16xf32>
    %56 = vector.extract_strided_slice %33 {offsets = [0, 16], sizes = [16, 16], strides = [1, 1]} : vector<16x64xf32> to vector<16x16xf32>
    %cst_23 = arith.constant dense<0.000000e+00> : vector<16x16xf32>
    %57 = tpu.matmul %55, %56, %cst_23 {dimension_numbers = #tpu.dot_dimension_numbers<[1], [1], [0], [0], [0, 0, 1, 0], [], []>} : vector<16x16xf32>, vector<16x16xf32>, vector<16x16xf32> -> vector<16x16xf32>
    %58 = arith.select %37, %57, %38 : vector<16x16xi1>, vector<16x16xf32>
    %cst_24 = arith.constant dense<0xFF800000> : vector<16xf32>
    %59 = vector.multi_reduction <maximumf>, %58, %cst_24 [1] : vector<16x16xf32> to vector<16xf32>
    %60 = vector.shape_cast %59 : vector<16xf32> to vector<16x1xf32>
    %61 = vector.broadcast %60 : vector<16x1xf32> to vector<16x16xf32>
    %62 = arith.subf %58, %61 : vector<16x16xf32>
    %63 = math.exp %62 : vector<16x16xf32>
    %cst_25 = arith.constant dense<0.000000e+00> : vector<16xf32>
    %64 = vector.multi_reduction <add>, %63, %cst_25 [1] : vector<16x16xf32> to vector<16xf32>
    %65 = vector.shape_cast %64 : vector<16xf32> to vector<16x1xf32>
    %66 = tpu.reciprocal %65 : vector<16x1xf32> -> vector<16x1xf32>
    %67 = vector.broadcast %66 : vector<16x1xf32> to vector<16x16xf32>
    %68 = arith.mulf %63, %67 : vector<16x16xf32>
    %69 = vector.extract_strided_slice %34 {offsets = [0, 16], sizes = [16, 16], strides = [1, 1]} : vector<16x64xf32> to vector<16x16xf32>
    %cst_26 = arith.constant dense<0.000000e+00> : vector<16x16xf32>
    %70 = tpu.matmul %68, %69, %cst_26 {dimension_numbers = #tpu.dot_dimension_numbers<[1], [0], [0], [1], [0, 0, 1, 1], [], []>} : vector<16x16xf32>, vector<16x16xf32>, vector<16x16xf32> -> vector<16x16xf32>
    %71 = vector.extract_strided_slice %32 {offsets = [0, 32], sizes = [16, 16], strides = [1, 1]} : vector<16x64xf32> to vector<16x16xf32>
    %72 = vector.extract_strided_slice %33 {offsets = [0, 32], sizes = [16, 16], strides = [1, 1]} : vector<16x64xf32> to vector<16x16xf32>
    %cst_27 = arith.constant dense<0.000000e+00> : vector<16x16xf32>
    %73 = tpu.matmul %71, %72, %cst_27 {dimension_numbers = #tpu.dot_dimension_numbers<[1], [1], [0], [0], [0, 0, 1, 0], [], []>} : vector<16x16xf32>, vector<16x16xf32>, vector<16x16xf32> -> vector<16x16xf32>
    %74 = arith.select %37, %73, %38 : vector<16x16xi1>, vector<16x16xf32>
    %cst_28 = arith.constant dense<0xFF800000> : vector<16xf32>
    %75 = vector.multi_reduction <maximumf>, %74, %cst_28 [1] : vector<16x16xf32> to vector<16xf32>
    %76 = vector.shape_cast %75 : vector<16xf32> to vector<16x1xf32>
    %77 = vector.broadcast %76 : vector<16x1xf32> to vector<16x16xf32>
    %78 = arith.subf %74, %77 : vector<16x16xf32>
    %79 = math.exp %78 : vector<16x16xf32>
    %cst_29 = arith.constant dense<0.000000e+00> : vector<16xf32>
    %80 = vector.multi_reduction <add>, %79, %cst_29 [1] : vector<16x16xf32> to vector<16xf32>
    %81 = vector.shape_cast %80 : vector<16xf32> to vector<16x1xf32>
    %82 = tpu.reciprocal %81 : vector<16x1xf32> -> vector<16x1xf32>
    %83 = vector.broadcast %82 : vector<16x1xf32> to vector<16x16xf32>
    %84 = arith.mulf %79, %83 : vector<16x16xf32>
    %85 = vector.extract_strided_slice %34 {offsets = [0, 32], sizes = [16, 16], strides = [1, 1]} : vector<16x64xf32> to vector<16x16xf32>
    %cst_30 = arith.constant dense<0.000000e+00> : vector<16x16xf32>
    %86 = tpu.matmul %84, %85, %cst_30 {dimension_numbers = #tpu.dot_dimension_numbers<[1], [0], [0], [1], [0, 0, 1, 1], [], []>} : vector<16x16xf32>, vector<16x16xf32>, vector<16x16xf32> -> vector<16x16xf32>
    %87 = vector.extract_strided_slice %32 {offsets = [0, 48], sizes = [16, 16], strides = [1, 1]} : vector<16x64xf32> to vector<16x16xf32>
    %88 = vector.extract_strided_slice %33 {offsets = [0, 48], sizes = [16, 16], strides = [1, 1]} : vector<16x64xf32> to vector<16x16xf32>
    %cst_31 = arith.constant dense<0.000000e+00> : vector<16x16xf32>
    %89 = tpu.matmul %87, %88, %cst_31 {dimension_numbers = #tpu.dot_dimension_numbers<[1], [1], [0], [0], [0, 0, 1, 0], [], []>} : vector<16x16xf32>, vector<16x16xf32>, vector<16x16xf32> -> vector<16x16xf32>
    %90 = arith.select %37, %89, %38 : vector<16x16xi1>, vector<16x16xf32>
    %cst_32 = arith.constant dense<0xFF800000> : vector<16xf32>
    %91 = vector.multi_reduction <maximumf>, %90, %cst_32 [1] : vector<16x16xf32> to vector<16xf32>
    %92 = vector.shape_cast %91 : vector<16xf32> to vector<16x1xf32>
    %93 = vector.broadcast %92 : vector<16x1xf32> to vector<16x16xf32>
    %94 = arith.subf %90, %93 : vector<16x16xf32>
    %95 = math.exp %94 : vector<16x16xf32>
    %cst_33 = arith.constant dense<0.000000e+00> : vector<16xf32>
    %96 = vector.multi_reduction <add>, %95, %cst_33 [1] : vector<16x16xf32> to vector<16xf32>
    %97 = vector.shape_cast %96 : vector<16xf32> to vector<16x1xf32>
    %98 = tpu.reciprocal %97 : vector<16x1xf32> -> vector<16x1xf32>
    %99 = vector.broadcast %98 : vector<16x1xf32> to vector<16x16xf32>
    %100 = arith.mulf %95, %99 : vector<16x16xf32>
    %101 = vector.extract_strided_slice %34 {offsets = [0, 48], sizes = [16, 16], strides = [1, 1]} : vector<16x64xf32> to vector<16x16xf32>
    %cst_34 = arith.constant dense<0.000000e+00> : vector<16x16xf32>
    %102 = tpu.matmul %100, %101, %cst_34 {dimension_numbers = #tpu.dot_dimension_numbers<[1], [0], [0], [1], [0, 0, 1, 1], [], []>} : vector<16x16xf32>, vector<16x16xf32>, vector<16x16xf32> -> vector<16x16xf32>
    %103 = tpu.concatenate %54, %70, %86, %102 in 1 : vector<16x16xf32>, vector<16x16xf32>, vector<16x16xf32>, vector<16x16xf32> -> vector<16x64xf32>
    %c0_35 = arith.constant 0 : index
    %c0_36 = arith.constant 0 : index
    %104 = vector.load %arg6[%c0_35, %c0_36] : memref<64x64xf32, #tpu.memory_space<vmem>>, vector<64x64xf32>
    %cst_37 = arith.constant dense<0.000000e+00> : vector<16x64xf32>
    %105 = tpu.matmul %103, %104, %cst_37 {dimension_numbers = #tpu.dot_dimension_numbers<[1], [0], [0], [1], [0, 0, 1, 1], [], []>} : vector<16x64xf32>, vector<64x64xf32>, vector<16x64xf32> -> vector<16x64xf32>
    %c0_38 = arith.constant 0 : index
    %c0_39 = arith.constant 0 : index
    %106 = vector.load %arg7[%c0_38, %c0_39] : memref<1x64xf32, #tpu.memory_space<vmem>>, vector<1x64xf32>
    %107 = vector.broadcast %106 : vector<1x64xf32> to vector<16x64xf32>
    %108 = arith.addf %105, %107 : vector<16x64xf32>
    %109 = arith.addf %0, %108 : vector<16x64xf32>
    %c0_40 = arith.constant 0 : index
    %c0_41 = arith.constant 0 : index
    %110 = vector.load %arg8[%c0_40, %c0_41] : memref<1x64xf32, #tpu.memory_space<vmem>>, vector<1x64xf32>
    %c0_42 = arith.constant 0 : index
    %c0_43 = arith.constant 0 : index
    %111 = vector.load %arg9[%c0_42, %c0_43] : memref<1x64xf32, #tpu.memory_space<vmem>>, vector<1x64xf32>
    %cst_44 = arith.constant dense<0.000000e+00> : vector<16xf32>
    %112 = vector.multi_reduction <add>, %109, %cst_44 [1] : vector<16x64xf32> to vector<16xf32>
    %113 = vector.shape_cast %112 : vector<16xf32> to vector<16x1xf32>
    %cst_45 = arith.constant 6.400000e+01 : f32
    %114 = vector.broadcast %cst_45 : f32 to vector<16x1xf32>
    %115 = arith.divf %113, %114 : vector<16x1xf32>
    %116 = vector.broadcast %115 : vector<16x1xf32> to vector<16x64xf32>
    %117 = arith.subf %109, %116 : vector<16x64xf32>
    %118 = arith.mulf %117, %117 : vector<16x64xf32>
    %cst_46 = arith.constant dense<0.000000e+00> : vector<16xf32>
    %119 = vector.multi_reduction <add>, %118, %cst_46 [1] : vector<16x64xf32> to vector<16xf32>
    %120 = vector.shape_cast %119 : vector<16xf32> to vector<16x1xf32>
    %cst_47 = arith.constant 6.400000e+01 : f32
    %121 = vector.broadcast %cst_47 : f32 to vector<16x1xf32>
    %122 = arith.divf %120, %121 : vector<16x1xf32>
    %123 = vector.broadcast %115 : vector<16x1xf32> to vector<16x64xf32>
    %124 = arith.subf %109, %123 : vector<16x64xf32>
    %cst_48 = arith.constant 9.99999974E-6 : f32
    %125 = vector.broadcast %cst_48 : f32 to vector<16x1xf32>
    %126 = arith.addf %122, %125 : vector<16x1xf32>
    %127 = math.rsqrt %126 : vector<16x1xf32>
    %128 = vector.broadcast %127 : vector<16x1xf32> to vector<16x64xf32>
    %129 = arith.mulf %124, %128 : vector<16x64xf32>
    %130 = vector.broadcast %110 : vector<1x64xf32> to vector<16x64xf32>
    %131 = arith.mulf %129, %130 : vector<16x64xf32>
    %132 = vector.broadcast %111 : vector<1x64xf32> to vector<16x64xf32>
    %133 = arith.addf %131, %132 : vector<16x64xf32>
    %c0_49 = arith.constant 0 : index
    %c0_50 = arith.constant 0 : index
    %134 = vector.load %arg10[%c0_49, %c0_50] : memref<64x128xf32, #tpu.memory_space<vmem>>, vector<64x128xf32>
    %cst_51 = arith.constant dense<0.000000e+00> : vector<16x128xf32>
    %135 = tpu.matmul %133, %134, %cst_51 {dimension_numbers = #tpu.dot_dimension_numbers<[1], [0], [0], [1], [0, 0, 1, 1], [], []>} : vector<16x64xf32>, vector<64x128xf32>, vector<16x128xf32> -> vector<16x128xf32>
    %c0_52 = arith.constant 0 : index
    %c0_53 = arith.constant 0 : index
    %136 = vector.load %arg11[%c0_52, %c0_53] : memref<1x128xf32, #tpu.memory_space<vmem>>, vector<1x128xf32>
    %137 = vector.broadcast %136 : vector<1x128xf32> to vector<16x128xf32>
    %138 = arith.addf %135, %137 : vector<16x128xf32>
    %cst_54 = arith.constant 5.000000e-01 : f32
    %139 = vector.broadcast %cst_54 : f32 to vector<16x128xf32>
    %140 = arith.mulf %139, %138 : vector<16x128xf32>
    %141 = arith.mulf %138, %138 : vector<16x128xf32>
    %142 = arith.mulf %138, %141 : vector<16x128xf32>
    %cst_55 = arith.constant 4.471500e-02 : f32
    %143 = vector.broadcast %cst_55 : f32 to vector<16x128xf32>
    %144 = arith.mulf %143, %142 : vector<16x128xf32>
    %145 = arith.addf %138, %144 : vector<16x128xf32>
    %cst_56 = arith.constant 0.797884583 : f32
    %146 = vector.broadcast %cst_56 : f32 to vector<16x128xf32>
    %147 = arith.mulf %146, %145 : vector<16x128xf32>
    %148 = math.tanh %147 : vector<16x128xf32>
    %cst_57 = arith.constant 1.000000e+00 : f32
    %149 = vector.broadcast %cst_57 : f32 to vector<16x128xf32>
    %150 = arith.addf %149, %148 : vector<16x128xf32>
    %151 = arith.mulf %140, %150 : vector<16x128xf32>
    %c0_58 = arith.constant 0 : index
    %c0_59 = arith.constant 0 : index
    %152 = vector.load %arg12[%c0_58, %c0_59] : memref<128x64xf32, #tpu.memory_space<vmem>>, vector<128x64xf32>
    %cst_60 = arith.constant dense<0.000000e+00> : vector<16x64xf32>
    %153 = tpu.matmul %151, %152, %cst_60 {dimension_numbers = #tpu.dot_dimension_numbers<[1], [0], [0], [1], [0, 0, 1, 1], [], []>} : vector<16x128xf32>, vector<128x64xf32>, vector<16x64xf32> -> vector<16x64xf32>
    %c0_61 = arith.constant 0 : index
    %c0_62 = arith.constant 0 : index
    %154 = vector.load %arg13[%c0_61, %c0_62] : memref<1x64xf32, #tpu.memory_space<vmem>>, vector<1x64xf32>
    %155 = vector.broadcast %154 : vector<1x64xf32> to vector<16x64xf32>
    %156 = arith.addf %153, %155 : vector<16x64xf32>
    %157 = arith.addf %109, %156 : vector<16x64xf32>
    %c0_63 = arith.constant 0 : index
    %c0_64 = arith.constant 0 : index
    %158 = vector.load %arg14[%c0_63, %c0_64] : memref<16x64xf32, #tpu.memory_space<vmem>>, vector<16x64xf32>
    tpu.vector_store %arg14[%c0_63, %c0_64], %157 {strides = array<i32>} : memref<16x64xf32, #tpu.memory_space<vmem>>, vector<16x64xf32>,
    return
  }
}

</mosaic_0001>

<bundles_post_ra>
// kernel: tpu_custom_call.1
= control target key start
LH: loop header
LB: loop body
LE: loop exit
PB: predicated region body
PF: predicated region fallthrough
CT: control target
= control target key end

     0   :  { %19 = vsyncpa [#allocation3], 0  ;;  %s2282_s0 = inlined_call_operand.hbm [shape: f32[16,64], index: 0, kind: input, shape index: {}]   ;;  %s2283_s1 = inlined_call_operand.hbm [shape: f32[16,16], index: 1, kind: input, shape index: {}]   ;;  %s2284_s2 = inlined_call_operand.vmem [shape: f32[1,64], index: 2, kind: input, shape index: {}]   ;;  %s2285_s3 = inlined_call_operand.vmem [shape: f32[1,64], index: 3, kind: input, shape index: {}]   ;;  %s2286_s4 = inlined_call_operand.vmem [shape: f32[64,192], index: 4, kind: input, shape index: {}]   ;;  %s2287_s5 = inlined_call_operand.vmem [shape: f32[1,192], index: 5, kind: input, shape index: {}]   ;;  %s2288_s6 = inlined_call_operand.vmem [shape: f32[64,64], index: 6, kind: input, shape index: {}]   ;;  %s2289_s7 = inlined_call_operand.vmem [shape: f32[1,64], index: 7, kind: input, shape index: {}]   ;;  %s2290_s8 = inlined_call_operand.vmem [shape: f32[1,64], index: 8, kind: input, shape index: {}]   ;;  %s2291_s9 = inlined_call_operand.vmem [shape: f32[1,64], index: 9, kind: input, shape index: {}]   ;;  %s2292_s10 = inlined_call_operand.hbm [shape: f32[64,128], index: 10, kind: input, shape index: {}]   ;;  %s2293_s11 = inlined_call_operand.vmem [shape: f32[1,128], index: 11, kind: input, shape index: {}]   ;;  %s2294_s12 = inlined_call_operand.vmem [shape: f32[128,64], index: 12, kind: input, shape index: {}]   ;;  %s2295_s13 = inlined_call_operand.vmem [shape: f32[1,64], index: 13, kind: input, shape index: {}]   ;;  %s2296_s14 = inlined_call_operand.hbm [shape: f32[16,64], index: 14, kind: output, shape index: {}]  }
   0x1   :  { %20 = vsyncpa [#allocation6], 0 }
   0x2   :  { %21 = vsyncpa [#allocation4], 0  ;;  %s1847_s29 = smov [#allocation5]   ;;  %s1848_s15 = smov [#allocation2]  }
   0x3   :  { %s39_s30 = sshll.u32 %s1847_s29, 4  ;;  %s27_s16 = sshll.u32 %s1848_s15, 4  ;;  %s40_s30 = int_to_ptr.vmem [resolvable:$true] %s39_s30  ;;  %s28_s16 = int_to_ptr.vmem [resolvable:$true] %s27_s16 }
   0x4   :  { %s1769_s17 = scalar_lea.vmem %s40_s30, 256  ;;  %p1774_p1 = scmp.lt.s32.totalorder %s40_s30, %s40_s30 }
   0x5   :  { %p1770_p0 = scmp.ne.s32.totalorder %s40_s30, %s1769_s17  ;;  %p1775_p2 = scmp.lt.s32.totalorder %s1769_s17, %s1769_s17 }
   0x7   :  { %p1776_p3 = por %p1775_p2, %p1774_p1 }
   0x9   :  { %p1777_p4 = pnand %p1776_p3, %p1770_p0 }
   0xb   :  { %1780 = shalt.err (!%p1777_p4)
}
   0xc   :  { %s1849_s18 = smov 128   ;;  %s1850_s19 = smov 8  }
   0xd   :  { %45 = dma.hbm_to_vmem [thread:$0]  %s2283_s1, 256, %s40_s30, [#allocation6], %s1849_s18, %s1849_s18, %s1850_s19  }
   0xe   :  { %s1789_s22 = scalar_lea.vmem %s28_s16, 256  ;;  %p1794_p6 = scmp.lt.s32.totalorder %s28_s16, %s28_s16 }
   0xf   :  { %p1790_p5 = scmp.ne.s32.totalorder %s28_s16, %s1789_s22  ;;  %p1795_p7 = scmp.lt.s32.totalorder %s1789_s22, %s1789_s22 }
  0x11   :  { %p1796_p8 = por %p1795_p7, %p1794_p6 }
  0x13   :  { %p1797_p9 = pnand %p1796_p8, %p1790_p5 }
  0x15   :  { %1800 = shalt.err (!%p1797_p9)
}
  0x16   :  { %33 = dma.hbm_to_vmem [thread:$0]  %s2282_s0, 256, %s28_s16, [#allocation3], %s1849_s18, %s1849_s18, %s1850_s19  }
  0x17   :  { %s1851_s25 = smov [#allocation7]  }
  0x18   :  { %s67_s26 = sshll.u32 %s1851_s25, 4  ;;  %s68_s26 = int_to_ptr.vmem [resolvable:$true] %s67_s26 }
  0x19   :  { %s1809_s27 = scalar_lea.vmem %s68_s26, 1024  ;;  %p1814_p11 = scmp.lt.s32.totalorder %s68_s26, %s68_s26 }
  0x1a   :  { %p1810_p10 = scmp.ne.s32.totalorder %s68_s26, %s1809_s27  ;;  %p1815_p12 = scmp.lt.s32.totalorder %s1809_s27, %s1809_s27 }
  0x1c   :  { %p1816_p13 = por %p1815_p12, %p1814_p11 }
  0x1e   :  { %p1817_p0 = pnand %p1816_p13, %p1810_p10 }
  0x20   :  { %1820 = shalt.err (!%p1817_p0)
}
  0x21   :  { %73 = dma.hbm_to_vmem [thread:$0]  %s2292_s10, 1024, %s68_s26, [#allocation6], %s1849_s18, %s1849_s18, %s1850_s19  }
  0x22   :  { %1841 = dma.done.wait [#allocation3], 256  }
  0x23   :  { %1842 = vsyncadd [#allocation3], 4294967040 }
  0x24   :  { %1843 = dma.done.wait [#allocation6], 1280  }
  0x25   :  { %1844 = vsyncadd [#allocation6], 4294966016  ;;  %vm93_vm0 = vcmask 523264   ;;  %v1954_v0 = vld [vmem:[#allocation2] sm:$0xff]  ;;  %v1956_v1 = vld [vmem:[#allocation2 + $0x8] sm:$0xff]  ;;  %v1852_v19 = vmov 0.0   ;;  %v155_v47 = vlaneseq }
  0x26   :  { %v94_v2 = vsel %vm93_vm0, %v1954_v0, 0.0  ;;  %v97_v3 = vsel %vm93_vm0, %v1956_v1, 0.0  ;;  %v152_v14 = vld [vmem:[%s2286_s4 + $0x78] sm:$0xff]  ;;  %v151_v15 = vld [vmem:[%s2286_s4 + $0x70] sm:$0xff]  ;;  %v150_v16 = vld [vmem:[%s2286_s4 + $0x68] sm:$0xff]  ;;  %235 = vmatprep.mubr.f32.mxu0 %v1852_v19  ;;  %vm260_vm1 = vcmask 130048  }
  0x27   :  { %95 = vadd.xlane.f32.xlu0 %v94_v2  ;;  %187 = vmatprep.subr.mxu0 %v152_v14  ;;  %v149_v17 = vld [vmem:[%s2286_s4 + $0x60] sm:$0xff]  ;;  %v148_v18 = vld [vmem:[%s2286_s4 + $0x58] sm:$0xff]  ;;  %v147_v20 = vld [vmem:[%s2286_s4 + $0x50] sm:$0xff]  ;;  %v156_v48 = vshrl.u32 %v155_v47, 7  ;;  %s1855_s29 = smov 112   ;;  %s1856_s30 = smov 32  }
  0x28   :  { %188 = vmatpush1.msra.mxu0 %v151_v15  ;;  %v146_v21 = vld [vmem:[%s2286_s4 + $0x48] sm:$0xff]  ;;  %v145_v22 = vld [vmem:[%s2286_s4 + $0x40] sm:$0xff]  ;;  %v144_v23 = vld [vmem:[%s2286_s4 + $0x38] sm:$0xff]  ;;  %s1857_s15 = smov 96   ;;  %s1858_s16 = smov 16   ;;  %vm1085_vm4 = vcmask 261120  }
  0x29   :  { %189 = vmatprep.subr.mxu0 %v150_v16  ;;  %v143_v24 = vld [vmem:[%s2286_s4 + $0x30] sm:$0xff]  ;;  %v142_v25 = vld [vmem:[%s2286_s4 + $0x28] sm:$0xff]  ;;  %v141_v26 = vld [vmem:[%s2286_s4 + $0x20] sm:$0xff]  ;;  %v157_v49 = vsub.s32 0, %v156_v48  ;;  %v161_v58 = vsub.s32 1, %v156_v48  ;;  %s1859_s17 = smov 80  }
  0x2a   :  { %190 = vmatpush1.msra.mxu0 %v149_v17  ;;  %v140_v27 = vld [vmem:[%s2286_s4 + $0x18] sm:$0xff]  ;;  %v139_v28 = vld [vmem:[%s2286_s4 + $0x10] sm:$0xff]  ;;  %v138_v29 = vld [vmem:[%s2286_s4 + $0x8] sm:$0xff]  ;;  %vm1088_vm5 = vcmask 392192   ;;  %s1860_s26 = smov [#allocation8]  }
  0x2b   :  { %98 = vadd.xlane.f32.xlu0 %v97_v3  ;;  %191 = vmatprep.subr.mxu0 %v148_v18  ;;  %v137_v30 = vld [vmem:[%s2286_s4] sm:$0xff]  ;;  %s1454_s27 = sshll.u32 %s1860_s26, 4  ;;  %s1455_s27 = int_to_ptr.vmem [resolvable:$true] %s1454_s27 }
  0x2c   :  { %192 = vmatpush1.msra.mxu0 %v147_v20  ;;  %v1467_v38 = vld [vmem:[%s2284_s2] ss:$0 sm:$0xff]  ;;  %s1821_s1 = scalar_lea.vmem %s1455_s27, 256  ;;  %p1826_p2 = scmp.lt.s32.totalorder %s1455_s27, %s1455_s27 }
  0x2d   :  { %193 = vmatprep.subr.mxu0 %v146_v21  ;;  %v1468_v40 = vld [vmem:[%s2285_s3] ss:$0 sm:$0xff]  ;;  %s1853_s3 = smov 64   ;;  %p1822_p1 = scmp.ne.s32.totalorder %s1455_s27, %s1821_s1 }
  0x2e   :  { %194 = vmatpush1.msra.mxu0 %v145_v22  ;;  %v153_v50 = vld [vmem:[%s2287_s5] sm:$0x3]  ;;  %s1854_s5 = smov 48   ;;  %p1827_p3 = scmp.lt.s32.totalorder %s1821_s1, %s1821_s1 }
  0x2f   :  { %195 = vmatprep.subr.mxu0 %v144_v23  ;;  %v158_v51 = vrot.slane %v153_v50, %v157_v49  ;;  %v162_v62 = vrot.slane %v153_v50, %v161_v58 }
  0x30   :  { %196 = vmatpush1.msra.mxu0 %v143_v24  ;;  %p1828_p4 = por %p1827_p3, %p1826_p2 }
  0x31   :  { %197 = vmatprep.subr.mxu0 %v142_v25 }
  0x32   :  { %198 = vmatpush1.msra.mxu0 %v141_v26  ;;  %p1829_p5 = pnand %p1828_p4, %p1822_p1 }
  0x33   :  { %199 = vmatprep.subr.mxu0 %v140_v27 }
  0x34   :  { %200 = vmatpush1.msra.mxu0 %v139_v28 }
  0x35   :  { %201 = vmatprep.subr.mxu0 %v138_v29 }
  0x36   :  { %202 = vmatpush1.msra.mxu0 %v137_v30 }
  0xb0   :  { %v96_v4 = vpop.xlane.xlu0 %95 }
  0xb1   :  { %v101_v5 = vmul.f32 0.015625, %v96_v4  ;;  %v2053_v4 = vld [vmem:[#allocation5 + $0x8] sm:$0xff] }
  0xb2   :  { %vm253_vm2 = vcmp.gt.f32.partialorder %v2053_v4, 0.5 }
  0xb3   :  { %v103_v6 = vsub.f32 %v1954_v0, %v101_v5  ;;  %v2055_v5 = vld [vmem:[#allocation5] sm:$0xff] }
  0xb4   :  { %v99_v7 = vpop.xlane.xlu0 %98  ;;  %vm252_vm3 = vcmp.gt.f32.partialorder %v2055_v5, 0.5 }
  0xb5   :  { %v102_v8 = vmul.f32 0.015625, %v99_v7  ;;  %v105_v9 = vmul.f32 %v103_v6, %v103_v6 }
  0xb7   :  { %v104_v10 = vsub.f32 %v1956_v1, %v102_v8  ;;  %v107_v11 = vsel %vm93_vm0, %v105_v9, 0.0 }
  0xb8   :  { %108 = vadd.xlane.f32.xlu1 %v107_v11 }
  0xb9   :  { %v106_v12 = vmul.f32 %v104_v10, %v104_v10 }
  0xbb   :  { %v110_v13 = vsel %vm93_vm0, %v106_v12, 0.0 }
  0xbc   :  { %111 = vadd.xlane.f32.xlu1 %v110_v13 }
 0x141   :  { %v109_v31 = vpop.xlane.xlu1 %108 }
 0x142   :  { %v113_v32 = vmul.f32 0.015625, %v109_v31 }
 0x144   :  { %v115_v33 = vadd.f32 1e-05, %v113_v32 }
 0x145   :  { %v112_v34 = vpop.xlane.xlu1 %111 }
 0x146   :  { %1717 = vrsqrt.f32 %v115_v33  ;;  %v114_v35 = vmul.f32 0.015625, %v112_v34 }
 0x148   :  { %v116_v36 = vadd.f32 1e-05, %v114_v35 }
 0x14a   :  { %1719 = vrsqrt.f32 %v116_v36 }
 0x153   :  { %v1718_v37 = vpop.eup %1717 }
 0x154   :  { %v119_v39 = vmul.f32 %v1718_v37, %v103_v6 }
 0x156   :  { %v127_v41 = vmul.f32 %v1467_v38, %v119_v39 }
 0x157   :  { %v1720_v42 = vpop.eup %1719 }
 0x158   :  { %v135_v43 = vadd.f32 %v1468_v40, %v127_v41  ;;  %v120_v44 = vmul.f32 %v1720_v42, %v104_v10 }
 0x15a   :  { %1469 = vmatmul.mubr.msk.f32.vlgmr.msra.gmra.mxu0 %vm93_vm0, %v135_v43  ;;  %v128_v45 = vmul.f32 %v1467_v38, %v120_v44 }
 0x15b   :  { %241 = vmatprep.mubr.f32.mxu0 %v1852_v19 }
 0x15c   :  { %v136_v46 = vadd.f32 %v1468_v40, %v128_v45 }
 0x15e   :  { %1470 = vmatmul.mubr.msk.f32.gmra.mxu0 %vm93_vm0, %v136_v46 }
 0x21a   :  { %v237_v52 = vpop.f32.mrf.mxu0 }
 0x21b   :  { %v2025_v53 = vadd.f32 %v237_v52, %v158_v51 }
 0x21c   :  { %v239_v54 = vpop.f32.mrf.mxu0 }
 0x21d   :  { %256 = vrot.lane.b32.xlu1 %v2025_v53, %s1853_s3  ;;  %v2029_v55 = vmul.f32 0.25, %v2025_v53  ;;  %v2046_v3 = vadd.f32 %v239_v54, %v162_v62 }
 0x21e   :  { %v243_v56 = vpop.f32.mrf.mxu0 }
 0x21f   :  { %v2031_v57 = vadd.f32 %v243_v56, %v158_v51  ;;  %1578 = vmatprep.mubr.msk.f32.mxu1 %vm260_vm1, %v2029_v55 }
 0x220   :  { %v245_v60 = vpop.f32.mrf.mxu0 }
 0x221   :  { %258 = vrot.lane.b32.xlu0 %v2031_v57, %s1853_s3  ;;  %v2039_v63 = vadd.f32 %v245_v60, %v162_v62  ;;  %v2044_v2 = vmul.f32 0.25, %v2031_v57 }
 0x28f   :  { %v257_v61 = vpop.permute.xlu1 %256 }
 0x293   :  { %v259_v59 = vpop.permute.xlu0 %258 }
 0x294   :  { %1574 = vmatprep.subr.msk.mxu1 %vm260_vm1, %v259_v59 }
 0x295   :  { %1575 = vmatpush3.xpose.msk.msra.mxu1 %vm260_vm1, %v259_v59 }
 0x296   :  { %1576 = vmatprep.subr.msk.mxu1 %vm260_vm1, %v257_v61 }
 0x299   :  { %1577 = vmatpush3.xpose.msk.msra.mxu1 %vm260_vm1, %v257_v61 }
 0x29a   :  { %1581 = vmatprep.subr.mxu1 %v2039_v63 }
 0x29c   :  { %1579 = vmatmul.mubr.msk.f32.vlgmr.msra.gmra.mxu1 %vm260_vm1, %v2044_v2 }
 0x29d   :  { %1582 = vmatpush3.msra.mxu1 %v2039_v63 }
 0x29e   :  { %1583 = vmatprep.subr.mxu1 %v2046_v3 }
 0x29f   :  { %1584 = vmatpush3.msra.mxu1 %v2046_v3 }
 0x35c   :  { %v1580_v6 = vpop.f32.mrf.mxu1 }
 0x35d   :  { %v347_v7 = vsel %vm253_vm2, %v1580_v6, -100000.0 }
 0x35e   :  { %v337_v8 = vpop.f32.mrf.mxu1  ;;  %v351_v9 = vsel %vm260_vm1, %v347_v7, -inf }
 0x35f   :  { %v346_v10 = vsel %vm252_vm3, %v337_v8, -100000.0  ;;  %352 = vmax.xlane.f32.xlu0 %v351_v9 }
 0x360   :  { %v348_v11 = vsel %vm260_vm1, %v346_v10, -inf }
 0x361   :  { %349 = vmax.xlane.f32.xlu1 %v348_v11 }
 0x3e8   :  { %v353_v12 = vpop.xlane.xlu0 %352 }
 0x3e9   :  { %v355_v13 = vsub.f32 %v347_v7, %v353_v12 }
 0x3ea   :  { %v350_v14 = vpop.xlane.xlu1 %349 }
 0x3eb   :  { %v358_v15 = vmul.f32 1.442695, %v355_v13  ;;  %v354_v16 = vsub.f32 %v346_v10, %v350_v14 }
 0x3ed   :  { %1721 = vpow2.f32 %v358_v15  ;;  %v356_v17 = vmul.f32 1.442695, %v354_v16 }
 0x3ef   :  { %1723 = vpow2.f32 %v356_v17 }
 0x3fa   :  { %v1722_v18 = vpop.eup %1721 }
 0x3fb   :  { %v363_v19 = vsel %vm260_vm1, %v1722_v18, 0.0 }
 0x3fc   :  { %v1724_v20 = vpop.eup %1723  ;;  %364 = vadd.xlane.f32.xlu1 %v363_v19 }
 0x3fd   :  { %v360_v21 = vsel %vm260_vm1, %v1724_v20, 0.0 }
 0x3fe   :  { %361 = vadd.xlane.f32.xlu0 %v360_v21 }
 0x40d   :  { %455 = vrot.lane.b32.xlu1 %v2025_v53, %s1854_s5 }
 0x411   :  { %451 = vrot.lane.b32.xlu1 %v2029_v55, %s1855_s29 }
 0x414   :  { %457 = vrot.lane.b32.xlu0 %v2031_v57, %s1854_s5 }
 0x415   :  { %661 = vrot.lane.b32.xlu1 %v2031_v57, %s1856_s30 }
 0x418   :  { %453 = vrot.lane.b32.xlu0 %v2044_v2, %s1855_s29 }
 0x419   :  { %659 = vrot.lane.b32.xlu1 %v2025_v53, %s1856_s30 }
 0x41c   :  { %655 = vrot.lane.b32.xlu0 %v2029_v55, %s1857_s15 }
 0x41d   :  { %657 = vrot.lane.b32.xlu1 %v2044_v2, %s1857_s15 }
 0x485   :  { %v365_v22 = vpop.xlane.xlu1 %364 }
 0x486   :  { %1725 = vrcp.f32 %v365_v22 }
 0x487   :  { %v362_v23 = vpop.xlane.xlu0 %361 }
 0x488   :  { %1727 = vrcp.f32 %v362_v23 }
 0x489   :  { %v456_v25 = vpop.permute.xlu1 %455 }
 0x48b   :  { %v458_v24 = vpop.permute.xlu0 %457 }
 0x48c   :  { %1588 = vmatprep.subr.msk.mxu1 %vm260_vm1, %v458_v24 }
 0x48d   :  { %v452_v28 = vpop.permute.xlu1 %451 }
 0x48f   :  { %v454_v31 = vpop.permute.xlu0 %453 }
 0x491   :  { %v662_v32 = vpop.permute.xlu1 %661 }
 0x493   :  { %v1726_v26 = vpop.eup %1725  ;;  %v656_v33 = vpop.permute.xlu0 %655 }
 0x494   :  { %v369_v30 = vmul.f32 %v1726_v26, %v1722_v18 }
 0x495   :  { %v1728_v27 = vpop.eup %1727  ;;  %v660_v34 = vpop.permute.xlu1 %659 }
 0x496   :  { %v368_v29 = vmul.f32 %v1728_v27, %v1724_v20 }
 0x498   :  { %1585 = vmatprep.mubr.msk.f32.mxu1 %vm260_vm1, %v368_v29 }
 0x499   :  { %1586 = vmatmul.mubr.msk.f32.vlgmr.msra.gmra.mxu1 %vm260_vm1, %v369_v30  ;;  %v658_v35 = vpop.permute.xlu1 %657 }
 0x49a   :  { %1589 = vmatpush3.xpose.msk.msra.mxu1 %vm260_vm1, %v458_v24  ;;  %1592 = vmatprep.mubr.msk.f32.mxu1 %vm260_vm1, %v452_v28 }
 0x49b   :  { %1590 = vmatprep.subr.msk.mxu1 %vm260_vm1, %v456_v25 }
 0x49e   :  { %1591 = vmatpush3.xpose.msk.msra.mxu1 %vm260_vm1, %v456_v25 }
 0x49f   :  { %1602 = vmatprep.subr.msk.mxu1 %vm260_vm1, %v662_v32 }
 0x4a1   :  { %1593 = vmatmul.mubr.msk.f32.vlgmr.msra.gmra.mxu1 %vm260_vm1, %v454_v31 }
 0x4a2   :  { %1603 = vmatpush3.xpose.msk.msra.mxu1 %vm260_vm1, %v662_v32  ;;  %1606 = vmatprep.mubr.msk.f32.mxu1 %vm260_vm1, %v656_v33 }
 0x4a3   :  { %1604 = vmatprep.subr.msk.mxu1 %vm260_vm1, %v660_v34 }
 0x4a6   :  { %1605 = vmatpush3.xpose.msk.msra.mxu1 %vm260_vm1, %v660_v34 }
 0x4a9   :  { %1607 = vmatmul.mubr.msk.f32.vlgmr.msra.gmra.mxu1 %vm260_vm1, %v658_v35 }
 0x559   :  { %v2097_v36 = vpop.f32.mrf.mxu1 }
 0x55b   :  { %v2099_v37 = vpop.f32.mrf.mxu1 }
 0x561   :  { %v1594_v38 = vpop.f32.mrf.mxu1 }
 0x562   :  { %v543_v39 = vsel %vm253_vm2, %v1594_v38, -100000.0 }
 0x563   :  { %v533_v40 = vpop.f32.mrf.mxu1  ;;  %v547_v41 = vsel %vm260_vm1, %v543_v39, -inf }
 0x564   :  { %v542_v42 = vsel %vm252_vm3, %v533_v40, -100000.0  ;;  %548 = vmax.xlane.f32.xlu1 %v547_v41 }
 0x565   :  { %v544_v43 = vsel %vm260_vm1, %v542_v42, -inf }
 0x566   :  { %545 = vmax.xlane.f32.xlu0 %v544_v43 }
 0x569   :  { %v1608_v44 = vpop.f32.mrf.mxu1 }
 0x56a   :  { %v747_v48 = vsel %vm253_vm2, %v1608_v44, -100000.0 }
 0x56b   :  { %v737_v45 = vpop.f32.mrf.mxu1  ;;  %v751_v49 = vsel %vm260_vm1, %v747_v48, -inf }
 0x56c   :  { %v746_v46 = vsel %vm252_vm3, %v737_v45, -100000.0 }
 0x56d   :  { %v748_v47 = vsel %vm260_vm1, %v746_v46, -inf }
 0x56e   :  { %749 = vmax.xlane.f32.xlu0 %v748_v47 }
 0x572   :  { %752 = vmax.xlane.f32.xlu0 %v751_v49 }
 0x575   :  { %568 = vrot.lane.b32.xlu1 %v2046_v3, %s1855_s29 }
 0x579   :  { %772 = vrot.lane.b32.xlu1 %v2039_v63, %s1857_s15 }
 0x57d   :  { %770 = vrot.lane.b32.xlu1 %v2046_v3, %s1857_s15 }
 0x588   :  { %570 = vrot.lane.b32.xlu0 %v2039_v63, %s1855_s29 }
 0x5ed   :  { %v549_v50 = vpop.xlane.xlu1 %548 }
 0x5ee   :  { %v551_v51 = vsub.f32 %v543_v39, %v549_v50 }
 0x5ef   :  { %v546_v52 = vpop.xlane.xlu0 %545 }
 0x5f0   :  { %v554_v54 = vmul.f32 1.442695, %v551_v51  ;;  %v550_v56 = vsub.f32 %v542_v42, %v546_v52 }
 0x5f1   :  { %v569_v7 = vpop.permute.xlu1 %568 }
 0x5f2   :  { %1729 = vpow2.f32 %v554_v54  ;;  %v552_v58 = vmul.f32 1.442695, %v550_v56 }
 0x5f4   :  { %1731 = vpow2.f32 %v552_v58 }
 0x5f5   :  { %v773_v14 = vpop.permute.xlu1 %772 }
 0x5f7   :  { %v750_v59 = vpop.xlane.xlu0 %749 }
 0x5f8   :  { %v754_v60 = vsub.f32 %v746_v46, %v750_v59 }
 0x5f9   :  { %v771_v19 = vpop.permute.xlu1 %770 }
 0x5fa   :  { %v756_v61 = vmul.f32 1.442695, %v754_v60 }
 0x5fb   :  { %v753_v62 = vpop.xlane.xlu0 %752 }
 0x5fc   :  { %1733 = vpow2.f32 %v756_v61  ;;  %v755_v6 = vsub.f32 %v747_v48, %v753_v62  ;;  %v1097_v62 = vld [vmem:[%s2288_s6 + $0x30] sm:$0xff] }
 0x5fe   :  { %v758_v8 = vmul.f32 1.442695, %v755_v6  ;;  %v1096_v6 = vld [vmem:[%s2288_s6 + $0x28] sm:$0xff] }
 0x5ff   :  { %v1730_v9 = vpop.eup %1729  ;;  %v571_v10 = vpop.permute.xlu0 %570 }
 0x600   :  { %1735 = vpow2.f32 %v758_v8  ;;  %1595 = vmatprep.subr.mxu0 %v571_v10  ;;  %v559_v11 = vsel %vm260_vm1, %v1730_v9, 0.0  ;;  %v1094_v8 = vld [vmem:[%s2288_s6 + $0x18] sm:$0xff] }
 0x601   :  { %v1732_v12 = vpop.eup %1731  ;;  %1596 = vmatpush3.msra.mxu0 %v571_v10  ;;  %560 = vadd.xlane.f32.xlu1 %v559_v11  ;;  %v1092_v10 = vld [vmem:[%s2288_s6 + $0x8] sm:$0xff]  ;;  %v1091_v11 = vld [vmem:[%s2288_s6] sm:$0xff] }
 0x602   :  { %1597 = vmatprep.subr.mxu0 %v569_v7  ;;  %v556_v13 = vsel %vm260_vm1, %v1732_v12, 0.0 }
 0x603   :  { %557 = vadd.xlane.f32.xlu0 %v556_v13  ;;  %1598 = vmatpush3.msra.mxu0 %v569_v7  ;;  %v1095_v7 = vld [vmem:[%s2288_s6 + $0x20] sm:$0xff] }
 0x604   :  { %1609 = vmatprep.subr.mxu0 %v773_v14 }
 0x609   :  { %v1734_v15 = vpop.eup %1733 }
 0x60a   :  { %v760_v16 = vsel %vm260_vm1, %v1734_v15, 0.0 }
 0x60b   :  { %761 = vadd.xlane.f32.xlu0 %v760_v16 }
 0x60d   :  { %v1736_v17 = vpop.eup %1735 }
 0x60e   :  { %v763_v18 = vsel %vm260_vm1, %v1736_v17, 0.0 }
 0x60f   :  { %764 = vadd.xlane.f32.xlu1 %v763_v18 }
 0x620   :  { %861 = vrot.lane.b32.xlu1 %v2025_v53, %s1858_s16 }
 0x621   :  { %863 = vrot.lane.b32.xlu0 %v2031_v57, %s1858_s16 }
 0x624   :  { %859 = vrot.lane.b32.xlu1 %v2044_v2, %s1859_s17 }
 0x625   :  { %857 = vrot.lane.b32.xlu0 %v2029_v55, %s1859_s17 }
 0x68a   :  { %v561_v20 = vpop.xlane.xlu1 %560 }
 0x68b   :  { %1737 = vrcp.f32 %v561_v20 }
 0x68c   :  { %v558_v21 = vpop.xlane.xlu0 %557 }
 0x68d   :  { %1739 = vrcp.f32 %v558_v21 }
 0x694   :  { %v762_v22 = vpop.xlane.xlu0 %761 }
 0x695   :  { %1741 = vrcp.f32 %v762_v22 }
 0x698   :  { %v765_v23 = vpop.xlane.xlu1 %764  ;;  %v1738_v24 = vpop.eup %1737 }
 0x699   :  { %1743 = vrcp.f32 %v765_v23  ;;  %v565_v57 = vmul.f32 %v1738_v24, %v1730_v9  ;;  %v864_v55 = vpop.permute.xlu0 %863  ;;  %v1093_v9 = vld [vmem:[%s2288_s6 + $0x10] sm:$0xff] }
 0x69a   :  { %v1740_v53 = vpop.eup %1739 }
 0x69b   :  { %v564_v25 = vmul.f32 %v1740_v53, %v1732_v12 }
 0x69c   :  { %v862_v30 = vpop.permute.xlu1 %861 }
 0x69d   :  { %1599 = vmatprep.mubr.msk.f32.mxu0 %vm260_vm1, %v564_v25  ;;  %v858_v29 = vpop.permute.xlu0 %857  ;;  %v1495_v25 = vld [vmem:[%s2289_s7] ss:$0 sm:$0xff] }
 0x69e   :  { %1600 = vmatmul.mubr.msk.f32.vlgmr.msra.gmra.mxu0 %vm260_vm1, %v565_v57 }
 0x69f   :  { %1610 = vmatpush3.msra.mxu0 %v773_v14 }
 0x6a0   :  { %1611 = vmatprep.subr.mxu0 %v771_v19  ;;  %v860_v31 = vpop.permute.xlu1 %859 }
 0x6a1   :  { %1612 = vmatpush3.msra.mxu0 %v771_v19 }
 0x6a2   :  { %v1742_v2 = vpop.eup %1741  ;;  %1616 = vmatprep.subr.msk.mxu0 %vm260_vm1, %v864_v55 }
 0x6a3   :  { %v768_v26 = vmul.f32 %v1742_v2, %v1734_v15 }
 0x6a5   :  { %1613 = vmatprep.mubr.msk.f32.mxu0 %vm260_vm1, %v768_v26 }
 0x6a6   :  { %v1744_v27 = vpop.eup %1743 }
 0x6a7   :  { %v769_v28 = vmul.f32 %v1744_v27, %v1736_v17 }
 0x6a9   :  { %1614 = vmatmul.mubr.msk.f32.vlgmr.msra.gmra.mxu0 %vm260_vm1, %v769_v28 }
 0x6aa   :  { %1617 = vmatpush3.xpose.msk.msra.mxu0 %vm260_vm1, %v864_v55  ;;  %1620 = vmatprep.mubr.msk.f32.mxu0 %vm260_vm1, %v858_v29 }
 0x6ab   :  { %1618 = vmatprep.subr.msk.mxu0 %vm260_vm1, %v862_v30 }
 0x6ae   :  { %1619 = vmatpush3.xpose.msk.msra.mxu0 %vm260_vm1, %v862_v30 }
 0x6b1   :  { %1621 = vmatmul.mubr.msk.f32.vlgmr.msra.gmra.mxu0 %vm260_vm1, %v860_v31 }
 0x75e   :  { %v1601_v32 = vpop.f32.mrf.mxu0 }
 0x760   :  { %v646_v33 = vpop.f32.mrf.mxu0 }
 0x769   :  { %v1615_v34 = vpop.f32.mrf.mxu0 }
 0x76b   :  { %v848_v35 = vpop.f32.mrf.mxu0 }
 0x771   :  { %v1622_v38 = vpop.f32.mrf.mxu0 }
 0x772   :  { %v949_v39 = vsel %vm253_vm2, %v1622_v38, -100000.0 }
 0x773   :  { %v939_v40 = vpop.f32.mrf.mxu0  ;;  %v953_v41 = vsel %vm260_vm1, %v949_v39, -inf }
 0x774   :  { %v948_v42 = vsel %vm252_vm3, %v939_v40, -100000.0  ;;  %954 = vmax.xlane.f32.xlu1 %v953_v41  ;;  %v1239_v40 = vld [vmem:[#allocation7 + $0x30] sm:$0xff]  ;;  %v1238_v41 = vld [vmem:[#allocation7 + $0x28] sm:$0xff] }
 0x775   :  { %v950_v43 = vsel %vm260_vm1, %v948_v42, -inf }
 0x776   :  { %951 = vmax.xlane.f32.xlu0 %v950_v43  ;;  %v1236_v43 = vld [vmem:[#allocation7 + $0x18] sm:$0xff] }
 0x785   :  { %972 = vrot.lane.b32.xlu1 %v2046_v3, %s1859_s17 }
 0x789   :  { %1061 = vrot.lane.b32.xlu1 %v646_v33, %s1858_s16 }
 0x78d   :  { %1063 = vrot.lane.b32.xlu1 %v1601_v32, %s1858_s16 }
 0x791   :  { %1071 = vrot.lane.b32.xlu1 %v1615_v34, %s1856_s30 }
 0x7fd   :  { %v955_v4 = vpop.xlane.xlu1 %954 }
 0x7fe   :  { %v957_v44 = vsub.f32 %v949_v39, %v955_v4  ;;  %v1240_v39 = vld [vmem:[#allocation7 + $0x38] sm:$0xff]  ;;  %v1235_v4 = vld [vmem:[#allocation7 + $0x10] sm:$0xff] }
 0x7ff   :  { %v952_v45 = vpop.xlane.xlu0 %951 }
 0x800   :  { %v960_v46 = vmul.f32 1.442695, %v957_v44  ;;  %v956_v47 = vsub.f32 %v948_v42, %v952_v45  ;;  %v1237_v42 = vld [vmem:[#allocation7 + $0x20] sm:$0xff]  ;;  %v1234_v44 = vld [vmem:[#allocation7 + $0x8] sm:$0xff] }
 0x801   :  { %v973_v56 = vpop.permute.xlu1 %972  ;;  %v1233_v45 = vld [vmem:[#allocation7] sm:$0xff] }
 0x802   :  { %1745 = vpow2.f32 %v960_v46  ;;  %v958_v5 = vmul.f32 1.442695, %v956_v47 }
 0x804   :  { %1747 = vpow2.f32 %v958_v5 }
 0x805   :  { %v1062_v14 = vpop.permute.xlu1 %1061 }
 0x806   :  { %v1083_v18 = vsel %vm260_vm1, %v2099_v37, %v1062_v14  ;;  %v1353_v14 = vld [vmem:[%s2294_s12 + $0x30] sm:$0xff] }
 0x809   :  { %v1064_v15 = vpop.permute.xlu1 %1063 }
 0x80a   :  { %v1084_v20 = vsel %vm260_vm1, %v2097_v36, %v1064_v15  ;;  %v1352_v15 = vld [vmem:[%s2294_s12 + $0x28] sm:$0xff] }
 0x80d   :  { %v1072_v16 = vpop.permute.xlu1 %1071 }
 0x80e   :  { %v1087_v23 = vsel %vm1085_vm4, %v1084_v20, %v1072_v16  ;;  %v1351_v16 = vld [vmem:[%s2294_s12 + $0x20] sm:$0xff] }
 0x80f   :  { %v1746_v48 = vpop.eup %1745  ;;  %v1347_v20 = vld [vmem:[%s2294_s12] sm:$0xff] }
 0x810   :  { %v965_v49 = vsel %vm260_vm1, %v1746_v48, 0.0 }
 0x811   :  { %v1748_v50 = vpop.eup %1747  ;;  %966 = vadd.xlane.f32.xlu0 %v965_v49 }
 0x812   :  { %v962_v3 = vsel %vm260_vm1, %v1748_v50, 0.0 }
 0x815   :  { %963 = vadd.xlane.f32.xlu0 %v962_v3 }
 0x82b   :  { %974 = vrot.lane.b32.xlu0 %v2039_v63, %s1859_s17  ;;  %v1098_v63 = vld [vmem:[%s2288_s6 + $0x38] sm:$0xff] }
 0x82c   :  { %1630 = vmatprep.subr.mxu0 %v1098_v63 }
 0x82d   :  { %1631 = vmatpush3.msra.mxu0 %v1098_v63 }
 0x82e   :  { %1632 = vmatprep.subr.mxu0 %v1097_v62 }
 0x82f   :  { %1069 = vrot.lane.b32.xlu0 %v848_v35, %s1856_s30  ;;  %1633 = vmatpush3.msra.mxu0 %v1097_v62  ;;  %v1362_v62 = vld [vmem:[%s2294_s12 + $0x78] sm:$0xff] }
 0x830   :  { %1634 = vmatprep.subr.mxu0 %v1096_v6 }
 0x831   :  { %1635 = vmatpush3.msra.mxu0 %v1096_v6  ;;  %v1361_v6 = vld [vmem:[%s2294_s12 + $0x70] sm:$0xff] }
 0x832   :  { %1636 = vmatprep.subr.mxu0 %v1095_v7 }
 0x833   :  { %1637 = vmatpush3.msra.mxu0 %v1095_v7  ;;  %v1360_v7 = vld [vmem:[%s2294_s12 + $0x68] sm:$0xff] }
 0x834   :  { %1638 = vmatprep.subr.mxu0 %v1094_v8 }
 0x835   :  { %1639 = vmatpush3.msra.mxu0 %v1094_v8  ;;  %v1359_v8 = vld [vmem:[%s2294_s12 + $0x60] sm:$0xff] }
 0x836   :  { %1640 = vmatprep.subr.mxu0 %v1093_v9 }
 0x837   :  { %1641 = vmatpush3.msra.mxu0 %v1093_v9  ;;  %v1358_v9 = vld [vmem:[%s2294_s12 + $0x58] sm:$0xff] }
 0x838   :  { %1642 = vmatprep.subr.mxu0 %v1092_v10 }
 0x839   :  { %1643 = vmatpush3.msra.mxu0 %v1092_v10  ;;  %v1357_v10 = vld [vmem:[%s2294_s12 + $0x50] sm:$0xff] }
 0x83a   :  { %1644 = vmatprep.subr.mxu0 %v1091_v11 }
 0x83b   :  { %1645 = vmatpush3.msra.mxu0 %v1091_v11  ;;  %v1356_v11 = vld [vmem:[%s2294_s12 + $0x48] sm:$0xff] }
 0x83c   :  { %1649 = vmatprep.subr.mxu0 %v1240_v39 }
 0x89a   :  { %v967_v51 = vpop.xlane.xlu0 %966 }
 0x89b   :  { %1749 = vrcp.f32 %v967_v51  ;;  %v1498_v51 = vld [vmem:[%s2290_s8] ss:$0 sm:$0xff] }
 0x89e   :  { %v964_v52 = vpop.xlane.xlu0 %963 }
 0x89f   :  { %1751 = vrcp.f32 %v964_v52 }
 0x8a2   :  { %v975_v54 = vpop.permute.xlu0 %974 }
 0x8a3   :  { %1623 = vmatprep.subr.mxu1 %v975_v54 }
 0x8a4   :  { %1624 = vmatpush3.msra.mxu1 %v975_v54  ;;  %v1499_v54 = vld [vmem:[%s2291_s9] ss:$0 sm:$0xff] }
 0x8a5   :  { %1625 = vmatprep.subr.mxu1 %v973_v56 }
 0x8a6   :  { %1626 = vmatpush3.msra.mxu1 %v973_v56  ;;  %v1070_v17 = vpop.permute.xlu0 %1069 }
 0x8a7   :  { %v1086_v21 = vsel %vm1085_vm4, %v1083_v18, %v1070_v17  ;;  %1668 = vmatprep.subr.mxu1 %v1362_v62  ;;  %v1350_v17 = vld [vmem:[%s2294_s12 + $0x18] sm:$0xff]  ;;  %v1349_v18 = vld [vmem:[%s2294_s12 + $0x10] sm:$0xff] }
 0x8a8   :  { %v1750_v58 = vpop.eup %1749 }
 0x8a9   :  { %v971_v61 = vmul.f32 %v1750_v58, %v1746_v48 }
 0x8ac   :  { %v1752_v59 = vpop.eup %1751 }
 0x8ad   :  { %v970_v60 = vmul.f32 %v1752_v59, %v1748_v50 }
 0x8af   :  { %1627 = vmatprep.mubr.msk.f32.mxu1 %vm260_vm1, %v970_v60 }
 0x8b0   :  { %1628 = vmatmul.mubr.msk.f32.vlgmr.msra.gmra.mxu1 %vm260_vm1, %v971_v61 }
 0x8b1   :  { %1669 = vmatpush3.msra.mxu1 %v1362_v62 }
 0x8b2   :  { %1670 = vmatprep.subr.mxu1 %v1361_v6 }
 0x8b3   :  { %1671 = vmatpush3.msra.mxu1 %v1361_v6 }
 0x8b4   :  { %1672 = vmatprep.subr.mxu1 %v1360_v7 }
 0x8b5   :  { %1673 = vmatpush3.msra.mxu1 %v1360_v7 }
 0x8b6   :  { %1674 = vmatprep.subr.mxu1 %v1359_v8 }
 0x8b7   :  { %1675 = vmatpush3.msra.mxu1 %v1359_v8 }
 0x8b8   :  { %1676 = vmatprep.subr.mxu1 %v1358_v9 }
 0x8b9   :  { %1677 = vmatpush3.msra.mxu1 %v1358_v9 }
 0x8ba   :  { %1678 = vmatprep.subr.mxu1 %v1357_v10 }
 0x8bb   :  { %1679 = vmatpush3.msra.mxu1 %v1357_v10 }
 0x8bc   :  { %1680 = vmatprep.subr.mxu1 %v1356_v11 }
 0x8bd   :  { %1681 = vmatpush3.msra.mxu1 %v1356_v11 }
 0x970   :  { %v1629_v12 = vpop.f32.mrf.mxu1 }
 0x971   :  { %1079 = vrot.lane.b32.xlu1 %v1629_v12, %s1854_s5  ;;  %v1355_v12 = vld [vmem:[%s2294_s12 + $0x40] sm:$0xff] }
 0x972   :  { %v1050_v13 = vpop.f32.mrf.mxu1  ;;  %1682 = vmatprep.subr.mxu1 %v1355_v12 }
 0x973   :  { %1077 = vrot.lane.b32.xlu0 %v1050_v13, %s1854_s5  ;;  %v1354_v13 = vld [vmem:[%s2294_s12 + $0x38] sm:$0xff]  ;;  %1683 = vmatpush3.msra.mxu1 %v1355_v12 }
 0x974   :  { %1684 = vmatprep.subr.mxu1 %v1354_v13 }
 0x975   :  { %1685 = vmatpush3.msra.mxu1 %v1354_v13 }
 0x976   :  { %1686 = vmatprep.subr.mxu1 %v1353_v14 }
 0x977   :  { %1687 = vmatpush3.msra.mxu1 %v1353_v14 }
 0x978   :  { %1688 = vmatprep.subr.mxu1 %v1352_v15 }
 0x979   :  { %1689 = vmatpush3.msra.mxu1 %v1352_v15 }
 0x97a   :  { %1690 = vmatprep.subr.mxu1 %v1351_v16 }
 0x97b   :  { %1691 = vmatpush3.msra.mxu1 %v1351_v16 }
 0x97c   :  { %1692 = vmatprep.subr.mxu1 %v1350_v17 }
 0x97d   :  { %1693 = vmatpush3.msra.mxu1 %v1350_v17 }
 0x97e   :  { %1694 = vmatprep.subr.mxu1 %v1349_v18 }
 0x97f   :  { %1695 = vmatpush3.msra.mxu1 %v1349_v18 }
 0x9e3   :  { %v1080_v19 = vpop.permute.xlu1 %1079 }
 0x9e4   :  { %v1090_v53 = vsel %vm1088_vm5, %v1087_v23, %v1080_v19  ;;  %v1348_v19 = vld [vmem:[%s2294_s12 + $0x8] sm:$0xff] }
 0x9e5   :  { %v1078_v22 = vpop.permute.xlu0 %1077  ;;  %1696 = vmatprep.subr.mxu1 %v1348_v19 }
 0x9e6   :  { %v1089_v24 = vsel %vm1088_vm5, %v1086_v21, %v1078_v22  ;;  %1697 = vmatpush3.msra.mxu1 %v1348_v19  ;;  %v1500_v21 = vld [vmem:[%s2293_s11] ss:$0 sm:$0xff] }
 0x9e7   :  { %1646 = vmatprep.mubr.msk.f32.mxu0 %vm93_vm0, %v1089_v24  ;;  %1698 = vmatprep.subr.mxu1 %v1347_v20 }
 0x9e8   :  { %1647 = vmatmul.mubr.msk.f32.vlgmr.msra.gmra.mxu0 %vm93_vm0, %v1090_v53  ;;  %1699 = vmatpush3.msra.mxu1 %v1347_v20 }
 0x9e9   :  { %1650 = vmatpush3.msra.mxu0 %v1240_v39 }
 0x9ea   :  { %1651 = vmatprep.subr.mxu0 %v1239_v40 }
 0x9eb   :  { %1652 = vmatpush3.msra.mxu0 %v1239_v40  ;;  %v1503_v40 = vld [vmem:[%s2295_s13] ss:$0 sm:$0xff] }
 0x9ec   :  { %1653 = vmatprep.subr.mxu0 %v1238_v41 }
 0x9ed   :  { %1654 = vmatpush3.msra.mxu0 %v1238_v41 }
 0x9ee   :  { %1655 = vmatprep.subr.mxu0 %v1237_v42 }
 0x9ef   :  { %1656 = vmatpush3.msra.mxu0 %v1237_v42 }
 0x9f0   :  { %1657 = vmatprep.subr.mxu0 %v1236_v43 }
 0x9f1   :  { %1658 = vmatpush3.msra.mxu0 %v1236_v43 }
 0x9f2   :  { %1659 = vmatprep.subr.mxu0 %v1235_v4 }
 0x9f3   :  { %1660 = vmatpush3.msra.mxu0 %v1235_v4 }
 0x9f4   :  { %1661 = vmatprep.subr.mxu0 %v1234_v44 }
 0x9f5   :  { %1662 = vmatpush3.msra.mxu0 %v1234_v44 }
 0x9f6   :  { %1663 = vmatprep.subr.mxu0 %v1233_v45 }
 0x9f7   :  { %1664 = vmatpush3.msra.mxu0 %v1233_v45 }
 0xaa8   :  { %v1648_v57 = vpop.f32.mrf.mxu0 }
 0xaa9   :  { %v1184_v37 = vadd.f32 %v1648_v57, %v1495_v25 }
 0xaaa   :  { %v1178_v55 = vpop.f32.mrf.mxu0 }
 0xaab   :  { %v2197_v2 = vadd.f32 %v1184_v37, %v1956_v1  ;;  %v1179_v36 = vadd.f32 %v1495_v25, %v1178_v55 }
 0xaad   :  { %v2200_v26 = vadd.f32 %v1179_v36, %v1954_v0  ;;  %v1194_v27 = vsel %vm93_vm0, %v2197_v2, 0.0 }
 0xaae   :  { %1195 = vadd.xlane.f32.xlu1 %v1194_v27 }
 0xaaf   :  { %v1191_v28 = vsel %vm93_vm0, %v2200_v26, 0.0 }
 0xab0   :  { %1192 = vadd.xlane.f32.xlu0 %v1191_v28 }
 0xb37   :  { %v1196_v29 = vpop.xlane.xlu1 %1195 }
 0xb38   :  { %v1198_v30 = vmul.f32 0.015625, %v1196_v29 }
 0xb39   :  { %v1193_v31 = vpop.xlane.xlu0 %1192 }
 0xb3a   :  { %v1197_v32 = vmul.f32 0.015625, %v1193_v31  ;;  %v1200_v33 = vsub.f32 %v2197_v2, %v1198_v30 }
 0xb3c   :  { %v1199_v1 = vsub.f32 %v2200_v26, %v1197_v32  ;;  %v1202_v35 = vmul.f32 %v1200_v33, %v1200_v33 }
 0xb3e   :  { %v1201_v34 = vmul.f32 %v1199_v1, %v1199_v1  ;;  %v1206_v38 = vsel %vm93_vm0, %v1202_v35, 0.0 }
 0xb40   :  { %v1203_v0 = vsel %vm93_vm0, %v1201_v34, 0.0 }
 0xb41   :  { %1204 = vadd.xlane.f32.xlu0 %v1203_v0 }
 0xb45   :  { %1207 = vadd.xlane.f32.xlu0 %v1206_v38 }
 0xbca   :  { %v1205_v46 = vpop.xlane.xlu0 %1204 }
 0xbcb   :  { %v1209_v47 = vmul.f32 0.015625, %v1205_v46 }
 0xbcd   :  { %v1211_v5 = vadd.f32 1e-05, %v1209_v47 }
 0xbce   :  { %v1208_v48 = vpop.xlane.xlu0 %1207 }
 0xbcf   :  { %1753 = vrsqrt.f32 %v1211_v5  ;;  %v1210_v49 = vmul.f32 0.015625, %v1208_v48 }
 0xbd1   :  { %v1212_v50 = vadd.f32 1e-05, %v1210_v49 }
 0xbd3   :  { %1755 = vrsqrt.f32 %v1212_v50 }
 0xbdc   :  { %v1754_v3 = vpop.eup %1753 }
 0xbdd   :  { %v1215_v52 = vmul.f32 %v1754_v3, %v1199_v1 }
 0xbdf   :  { %v1223_v56 = vmul.f32 %v1498_v51, %v1215_v52 }
 0xbe0   :  { %v1756_v58 = vpop.eup %1755 }
 0xbe1   :  { %v1216_v59 = vmul.f32 %v1756_v58, %v1200_v33  ;;  %v1231_v60 = vadd.f32 %v1499_v54, %v1223_v56 }
 0xbe3   :  { %v1224_v61 = vmul.f32 %v1498_v51, %v1216_v59  ;;  %1665 = vmatprep.mubr.msk.f32.mxu0 %vm93_vm0, %v1231_v60 }
 0xbe5   :  { %v1232_v63 = vadd.f32 %v1499_v54, %v1224_v61 }
 0xbe7   :  { %1666 = vmatmul.mubr.msk.f32.vlgmr.msra.gmra.mxu0 %vm93_vm0, %v1232_v63 }
 0xca7   :  { %v1667_v22 = vpop.f32.mrf.mxu0 }
 0xca8   :  { %v1326_v23 = vadd.f32 %v1667_v22, %v1500_v21 }
 0xca9   :  { %v1320_v24 = vpop.f32.mrf.mxu0 }
 0xcaa   :  { %v1332_v53 = vmul.f32 %v1326_v23, %v1326_v23  ;;  %v1321_v25 = vadd.f32 %v1500_v21, %v1320_v24  ;;  %v1330_v35 = vmul.f32 0.5, %v1326_v23 }
 0xcac   :  { %v1334_v57 = vmul.f32 %v1332_v53, %v1326_v23  ;;  %v1331_v37 = vmul.f32 %v1321_v25, %v1321_v25  ;;  %v1329_v34 = vmul.f32 0.5, %v1321_v25 }
 0xcae   :  { %v1336_v55 = vmul.f32 0.044715, %v1334_v57  ;;  %v1333_v36 = vmul.f32 %v1331_v37, %v1321_v25 }
 0xcb0   :  { %v1338_v27 = vadd.f32 %v1336_v55, %v1326_v23  ;;  %v1335_v28 = vmul.f32 0.044715, %v1333_v36 }
 0xcb2   :  { %v1340_v29 = vmul.f32 0.7978846, %v1338_v27  ;;  %v1337_v30 = vadd.f32 %v1335_v28, %v1321_v25 }
 0xcb4   :  { %1757 = vtanh.f32 %v1340_v29  ;;  %v1339_v31 = vmul.f32 0.7978846, %v1337_v30 }
 0xcb6   :  { %1759 = vtanh.f32 %v1339_v31 }
 0xcc1   :  { %v1758_v32 = vpop.eup %1757 }
 0xcc2   :  { %v1344_v1 = vadd.f32 1.0, %v1758_v32 }
 0xcc3   :  { %v1760_v33 = vpop.eup %1759 }
 0xcc4   :  { %v1343_v0 = vadd.f32 1.0, %v1760_v33  ;;  %v1346_v39 = vmul.f32 %v1344_v1, %v1330_v35 }
 0xcc6   :  { %v1345_v38 = vmul.f32 %v1343_v0, %v1329_v34 }
 0xcc8   :  { %1700 = vmatprep.mubr.f32.mxu1 %v1345_v38 }
 0xcc9   :  { %1701 = vmatmul.mubr.f32.vlgmr.msra.gmra.mxu1 %v1346_v39 }
 0xd89   :  { %v1702_v41 = vpop.f32.mrf.mxu1 }
 0xd8a   :  { %v1442_v42 = vadd.f32 %v1702_v41, %v1503_v40 }
 0xd8b   :  { %v1436_v43 = vpop.f32.mrf.mxu1 }
 0xd8c   :  { %v1446_v4 = vadd.f32 %v1442_v42, %v2197_v2  ;;  %v1437_v44 = vadd.f32 %v1503_v40, %v1436_v43 }
 0xd8e   :  { %1448 = vst.msk [vmem:[#allocation8 + $0x8] sm:$0xff] %vm93_vm0, %v1446_v4  ;;  %v1445_v45 = vadd.f32 %v1437_v44, %v2200_v26 }
 0xd90   :  { %1447 = vst.msk [vmem:[#allocation8] sm:$0xff] %vm93_vm0, %v1445_v45 }
 0xd91   :  { %1832 = shalt.err (!%p1829_p5)
}
 0xd92   :  { %1460 = dma.vmem_to_hbm [thread:$0]  %s1455_s27, 256, %s2296_s14, [#allocation4], %s1849_s18, %s1849_s18, %s1850_s19  }
 0xd93   :  { %1845 = dma.done.wait [#allocation4], 256  }
 0xd94   :  { %1846 = vsyncadd [#allocation4], 4294967040 }
 0xd95   :  { %1464 = vsyncpa [#allocation3], 1 }
 0xd96   :  { %1465 = vsyncpa [#allocation6], 1 }
 0xd97   :  { %1466 = vsyncpa [#allocation4], 1 }

</bundles_post_ra>
